<compile_context>
chip_gen: v7x
topology: tpu7x:2x2x1
jax: 0.10.0
libtpu: 0.0.40
codegen_flags: <defaults>
</compile_context>

<pallas_src>
import math

import jax
import jax.numpy as jnp
from jax.experimental import pallas as pl
from jax.experimental.pallas import tpu as pltpu

# Module hyper-parameters used in the test (AttWeightLoss(attn_weight, scale)).
ATTN_WEIGHT = (1, 1, 1, 1)
SCALE = 1

_MAX_CHUNK_PIX = 4096   # pixels per grid step; multiple of 8*128


def _round_up(x, m):
    return ((x + m - 1) // m) * m


def _nearest_downsample(x, factor):
    """F.interpolate(x, scale_factor=factor, mode='nearest') for NCHW."""
    _, _, H, W = x.shape
    oh = int(math.floor(H * factor))
    ow = int(math.floor(W * factor))
    iy = jnp.minimum((jnp.arange(oh) / factor).astype(jnp.int32), H - 1)
    ix = jnp.minimum((jnp.arange(ow) / factor).astype(jnp.int32), W - 1)
    return x[:, :, iy[:, None], ix[None, :]]


def _masked_sse_kernel(pcl_ref, p_ref, g_ref, out_ref):
    b = pl.program_id(0)
    # Per-sample 0/1 weight: samples with pos_click_len <= 1 contribute 0.
    w = (pcl_ref[b] > 1).astype(jnp.float32)

    p = p_ref[...].astype(jnp.float32)      # (1, 1, sub, 128)
    g = g_ref[...].astype(jnp.float32)
    d = p - g
    # Sublane-direction reduction only (keep the 128-lane axis); apply the
    # scalar sample weight once on the reduced block.
    out_ref[...] = w * jnp.sum(d * d, axis=2, keepdims=True)  # (1, 1, 1, 128)


def _masked_sse(pred_s, gt_s, pos_click_len):
    """sum_{b,c,y,x} weight_b * (pred_s - gt_s)**2 for one pyramid scale."""
    B = pred_s.shape[0]
    P = 1
    for s in pred_s.shape[1:]:
        P *= int(s)

    # Pixel chunk per grid step: lane-dense (multiple of 128); capped at
    # _MAX_CHUNK_PIX (multiple of 8*128) so large images tile into many
    # pipeline steps while VMEM per step stays tiny on v5e/v6e/v7x.
    chunk = _round_up(P, 128)
    if chunk > _MAX_CHUNK_PIX:
        chunk = _MAX_CHUNK_PIX
    P_pad = _round_up(P, chunk)
    n_chunks = P_pad // chunk
    sub = chunk // 128

    p2 = pred_s.reshape(B, P)
    g2 = gt_s.reshape(B, P)
    if P_pad != P:
        pad = ((0, 0), (0, P_pad - P))
        p2 = jnp.pad(p2, pad)   # zero padding -> (p - g) == 0, contributes 0
        g2 = jnp.pad(g2, pad)
    p4 = p2.reshape(B, n_chunks, sub, 128)
    g4 = g2.reshape(B, n_chunks, sub, 128)

    partials = pl.pallas_call(
        _masked_sse_kernel,
        out_shape=jax.ShapeDtypeStruct((B, n_chunks, 1, 128), jnp.float32),
        grid_spec=pltpu.PrefetchScalarGridSpec(
            num_scalar_prefetch=1,
            grid=(B, n_chunks),
            in_specs=[
                pl.BlockSpec((1, 1, sub, 128), lambda b, c, pcl: (b, c, 0, 0)),
                pl.BlockSpec((1, 1, sub, 128), lambda b, c, pcl: (b, c, 0, 0)),
            ],
            out_specs=pl.BlockSpec((1, 1, 1, 128),
                                   lambda b, c, pcl: (b, c, 0, 0)),
        ),
        compiler_params=pltpu.CompilerParams(
            dimension_semantics=("parallel", "parallel")),
    )(pos_click_len.astype(jnp.int32), p4, g4)

    # Tiny epilogue reduction (B * n_chunks * 128 floats) in plain JAX.
    return jnp.sum(partials)


def att_weight_loss(pred_list, gt, pos_click_len,
                    attn_weight=ATTN_WEIGHT, scale=SCALE):
    factors = (0.25 / scale, 0.125 / scale, 0.0625 / scale, 0.03125 / scale)
    gts = [_nearest_downsample(gt, f)
           for i, f in enumerate(factors) if attn_weight[i]]
    assert len(pred_list) == len(gts)

    loss = jnp.float32(0.0)
    for p, g in zip(pred_list, gts):
        denom = float(p.size)   # torch.mean over ALL elements (masked incl.)
        loss = loss + _masked_sse(p, g, pos_click_len) / denom
    return loss / len(gts)


def att_weight_loss_ref(pred_list, gt, pos_click_len,
                        attn_weight=ATTN_WEIGHT, scale=SCALE):
    """Pure-JAX reference of the PyTorch forward."""
    factors = (0.25 / scale, 0.125 / scale, 0.0625 / scale, 0.03125 / scale)
    gts = [_nearest_downsample(gt, f)
           for i, f in enumerate(factors) if attn_weight[i]]
    w = (pos_click_len > 1).astype(jnp.float32)[:, None, None, None]
    loss = 0.0
    for p, g in zip(pred_list, gts):
        se = (p - g) ** 2 * w
        loss = loss + jnp.mean(se)
    return loss / len(gts)


if __name__ == "__main__":
    key = jax.random.PRNGKey(0)
    k_gt, k_p0, k_p1, k_p2, k_p3 = jax.random.split(key, 5)
    k_pred = [k_p0, k_p1, k_p2, k_p3]

    B, C, H, W = 2, 1, 128, 128
    gt = (jax.random.uniform(k_gt, (B, C, H, W), dtype=jnp.float32) > 0.5
          ).astype(jnp.float32)

    factors = (0.25 / SCALE, 0.125 / SCALE, 0.0625 / SCALE, 0.03125 / SCALE)
    pred_list = []
    for i, f in enumerate(factors):
        if not ATTN_WEIGHT[i]:
            continue
        oh, ow = int(math.floor(H * f)), int(math.floor(W * f))
        pred_list.append(
            jax.random.normal(k_pred[i], (B, C, oh, ow), dtype=jnp.float32))

    # sample 0 has pos_click_len <= 1 -> its loss is zeroed; sample 1 counts.
    pos_click_len = jnp.array([1, 3], dtype=jnp.int32)

    out = att_weight_loss(pred_list, gt, pos_click_len)
    out = jax.block_until_ready(out)

    ref = att_weight_loss_ref(pred_list, gt, pos_click_len)
    assert jnp.allclose(out, ref, rtol=1e-5, atol=1e-6), (out, ref)

    print("KERNEL_OK")
</pallas_src>

<mosaic_0001>
module attributes {stable_mosaic.version = 11 : i64} {
  func.func @_masked_sse_kernel(%arg0: i32, %arg1: i32, %arg2: memref<2xi32, #tpu.memory_space<smem>>, %arg3: memref<1x1x8x128xf32, #tpu.memory_space<vmem>>, %arg4: memref<1x1x8x128xf32, #tpu.memory_space<vmem>>, %arg5: memref<1x1x1x128xf32, #tpu.memory_space<vmem>>) attributes {dimension_semantics = [#tpu.dimension_semantics<parallel>, #tpu.dimension_semantics<parallel>], iteration_bounds = array<i64: 2, 1>, scalar_prefetch = 1 : i64, scratch_operands = 0 : i64, tpu.core_type = #tpu.core_type<tc>, window_params = [{transform_indices = @transform_0, window_bounds = array<i64: 1, 1, 8, 128>}, {transform_indices = @transform_1, window_bounds = array<i64: 1, 1, 8, 128>}, {transform_indices = @transform_2, window_bounds = array<i64: 1, 1, 1, 128>}]} {
    %0 = arith.index_cast %arg0 : i32 to index
    %1 = memref.load %arg2[%0] : memref<2xi32, #tpu.memory_space<smem>>
    %c1_i32 = arith.constant 1 : i32
    %2 = arith.cmpi sgt, %1, %c1_i32 : i32
    %3 = arith.extui %2 : i1 to i32
    %4 = arith.sitofp %3 : i32 to f32
    %c0 = arith.constant 0 : index
    %c0_0 = arith.constant 0 : index
    %c0_1 = arith.constant 0 : index
    %c0_2 = arith.constant 0 : index
    %5 = vector.load %arg3[%c0, %c0_0, %c0_1, %c0_2] : memref<1x1x8x128xf32, #tpu.memory_space<vmem>>, vector<1x1x8x128xf32>
    %c0_3 = arith.constant 0 : index
    %c0_4 = arith.constant 0 : index
    %c0_5 = arith.constant 0 : index
    %c0_6 = arith.constant 0 : index
    %6 = vector.load %arg4[%c0_3, %c0_4, %c0_5, %c0_6] : memref<1x1x8x128xf32, #tpu.memory_space<vmem>>, vector<1x1x8x128xf32>
    %7 = arith.subf %5, %6 : vector<1x1x8x128xf32>
    %8 = arith.mulf %7, %7 : vector<1x1x8x128xf32>
    %cst = arith.constant dense<0.000000e+00> : vector<1x1x128xf32>
    %9 = vector.multi_reduction <add>, %8, %cst [2] : vector<1x1x8x128xf32> to vector<1x1x128xf32>
    %10 = vector.shape_cast %9 : vector<1x1x128xf32> to vector<1x1x1x128xf32>
    %11 = vector.broadcast %4 : f32 to vector<1x1x1x128xf32>
    %12 = arith.mulf %11, %10 : vector<1x1x1x128xf32>
    %c0_7 = arith.constant 0 : index
    %c0_8 = arith.constant 0 : index
    %c0_9 = arith.constant 0 : index
    %c0_10 = arith.constant 0 : index
    %13 = vector.load %arg5[%c0_7, %c0_8, %c0_9, %c0_10] : memref<1x1x1x128xf32, #tpu.memory_space<vmem>>, vector<1x1x1x128xf32>
    tpu.vector_store %arg5[%c0_7, %c0_8, %c0_9, %c0_10], %12 {strides = array<i32>} : memref<1x1x1x128xf32, #tpu.memory_space<vmem>>, vector<1x1x1x128xf32>,
    return
  }
  func.func @transform_0(%arg0: i32, %arg1: i32, %arg2: memref<2xi32, #tpu.memory_space<smem>>) -> (i32, i32, i32, i32) {
    %c0_i32 = arith.constant 0 : i32
    %c0_i32_0 = arith.constant 0 : i32
    %c0_i32_1 = arith.constant 0 : i32
    return %arg0, %arg1, %c0_i32, %c0_i32_0 : i32, i32, i32, i32
  }
  func.func @transform_1(%arg0: i32, %arg1: i32, %arg2: memref<2xi32, #tpu.memory_space<smem>>) -> (i32, i32, i32, i32) {
    %c0_i32 = arith.constant 0 : i32
    %c0_i32_0 = arith.constant 0 : i32
    %c0_i32_1 = arith.constant 0 : i32
    return %arg0, %arg1, %c0_i32, %c0_i32_0 : i32, i32, i32, i32
  }
  func.func @transform_2(%arg0: i32, %arg1: i32, %arg2: memref<2xi32, #tpu.memory_space<smem>>) -> (i32, i32, i32, i32) {
    %c0_i32 = arith.constant 0 : i32
    %c0_i32_0 = arith.constant 0 : i32
    %c0_i32_1 = arith.constant 0 : i32
    return %arg0, %arg1, %c0_i32, %c0_i32_0 : i32, i32, i32, i32
  }
}

</mosaic_0001>

<bundles_post_ra>
// kernel: tpu_custom_call.1
= control target key start
LH: loop header
LB: loop body
LE: loop exit
PB: predicated region body
PF: predicated region fallthrough
CT: control target
= control target key end

     0   :  { %s851_s0 = inlined_call_operand.hbm [shape: s32[2], index: 0, kind: input, shape index: {}]   ;;  %s852_s1 = inlined_call_operand.hbm [shape: f32[2,1,8,128], index: 1, kind: input, shape index: {}]   ;;  %s853_s2 = inlined_call_operand.hbm [shape: f32[2,1,8,128], index: 2, kind: input, shape index: {}]   ;;  %s854_s3 = inlined_call_operand.hbm [shape: f32[2,1,1,128], index: 3, kind: output, shape index: {}]  }
   0x1   :  { %s433_s14 = scalar_lea.hbm %s851_s0, 16 }
   0x2   :  { %p434_p0 = scmp.ne.s32.totalorder %s851_s0, %s433_s14  ;;  %p437_p1 = scmp.lt.u32.totalorder %s433_s14, %s851_s0 }
   0x4   :  { %p439_p2 = pnand %p437_p1, %p434_p0 }
   0x6   :  { %442 = shalt.err (!%p439_p2)  }
   0x7   :  { %s593_s19 = smov [#allocation3]  }
   0x8   :  { %9 = dma.hbm_to_smem %s851_s0, 16, %s593_s19, [#allocation2] }
   0x9   :  { %555 = dma.done.wait [#allocation2], 16 }
   0xa   :  { %556 = vsyncadd [#allocation2], 4294967280 }
   0xb   :  { %11 = sfence }
   0xc   :  { %12 = vsyncpa [#allocation5], 0 }
   0xd   :  { %14 = vsyncpa [#allocation5 + $0x1], 0 }
   0xe   :  { %15 = vsyncpa [#allocation8], 0 }
   0xf   :  { %17 = vsyncpa [#allocation8 + $0x1], 0 }
  0x10   :  { %18 = vsyncpa [#allocation6], 0 }
  0x11   :  { %20 = vsyncpa [#allocation6 + $0x1], 0  ;;  %s629_s22 = smov 0   ;;  %s631_s23 = smov 0  }
  0x12   :  { %s633_s24 = smov 0   ;;  %s635_s25 = smov 0  }
  0x13   :  { %s637_s26 = smov 0   ;;  %s639_s0 = smov 0  }
  0x14 LB: > { %s351_s27 = sadd.s32 4294967295, %s591_s0   ;;  %s352_s28 = sadd.s32 4294967294, %s591_s0   ;;  %s591_s0 = sphi %s639_s0, %s26_s0   ;;  %s587_s26 = sphi %s637_s26, %s874_s26   ;;  %s583_s25 = sphi %s635_s25, %s873_s25   ;;  %s579_s24 = sphi %s633_s24, %s872_s24   ;;  %s575_s23 = sphi %s631_s23, %s871_s23   ;;  %s571_s22 = sphi %s629_s22, %s870_s22  }
  0x15   : > { %s38_s29 = sadd.s32 1, %s587_s26  ;;  %s47_s30 = sadd.s32 1, %s579_s24 }
  0x16   : > { %p40_p3 = scmp.ge.s32.totalorder %s38_s29, 2  ;;  %p54_p4 = scmp.ne.s32.totalorder %s579_s24, %s575_s23 }
  0x17   : > { %p55_p5 = scmp.eq.s32.totalorder %s591_s0, 0  ;;  %p60_p6 = scmp.ne.s32.totalorder %s575_s23, %s571_s22 }
  0x18   : > { %s876_s29 = smov (%p40_p3, %s38_s29), 0  ;;  %p61_p8 = scmp.eq.s32.totalorder %s351_s27, 0 }
  0x19   : > { %p670_p7 = por %p55_p5, %p54_p4  ;;  %s42_s5 = ssub.s32 %s587_s26, %s876_s29 }
  0x1a   : > { %p114_p9 = scmp.eq.s32.totalorder %s351_s27, 1  ;;  %p45_p10 = scmp.eq.s32.totalorder %s42_s5, 0 }
  0x1b   : > { %p676_p11 = por %p61_p8, %p60_p6  ;;  %p120_p13 = scmp.eq.s32.totalorder %s352_s28, 1 }
  0x1c   : > { %p680_p12 = por %p114_p9, %p54_p4  ;;  %p382_p2 = scmp.lt.s32.totalorder %s591_s0, 2 }
  0x1d   : > { %s858_s6 = scalar_select %p676_p11, 1, 0 }
  0x1e   : > { %s859_s7 = scalar_select %p680_p12, 1, 0 }
  0x1f   : > { %s685_s8 = scalar_select %p45_p10, %s579_s24, %s47_s30  }
  0x20   : > { %p687_p0 = por %p120_p13, %p60_p6  ;;  %s694_s10 = sand.u32 1, %s579_s24  }
  0x21   : > { %s355_s11 = sshll.u32 %s694_s10, 3  ;;  %s356_s12 = sshll.u32 %s587_s26, 7 }
  0x22   : > { %s860_s9 = scalar_select %p687_p0, 1, 0 }
  0x23   : > { %s703_s15 = scalar_lea.hbm %s852_s1, %s356_s12  ;;  %s144_s16 = scalar_lea.vmem [#allocation4], %s355_s11 }
  0x24   : > { %s152_s17 = sshll.u32 %s144_s16, 4  ;;  %p711_p3 = pnand %p382_p2, %p670_p7  ;;  %s707_s17 = int_to_ptr.vmem [resolvable:$true] %s152_s17 }
  0x25   : > { %s141_s19 = scalar_lea.sflag [#allocation5], %s694_s10  ;;  %s443_s20 = scalar_lea.hbm %s703_s15, 128 }
  0x26   : > { %p444_p6 = scmp.ne.s32.totalorder %s703_s15, %s443_s20  ;;  %p445_p8 = pneg %p711_p3 }
  0x27   : > { %s448_s28 = scalar_lea.hbm %s852_s1, 256  ;;  %p449_p7 = scmp.lt.u32.totalorder %s703_s15, %s852_s1 }
  0x28   : > { %p446_p9 = pnand %p445_p8, %p444_p6  ;;  %p450_p13 = scmp.lt.u32.totalorder %s448_s28, %s443_s20 }
  0x29   : > { %p452_p1 = scmp.lt.u32.totalorder %s443_s20, %s703_s15 }
  0x2a   : > { %p447_p10 = pneg %p446_p9  ;;  %p451_p2 = por %p450_p13, %p449_p7 }
  0x2c   : > { %p453_p4 = por %p452_p1, %p451_p2 }
  0x2e   : > { %p454_p5 = pnand %p453_p4, %p447_p10 }
  0x30   : > { %457 = shalt.err (!%p454_p5)
}
  0x31   : > { %s458_s5 = scalar_lea.vmem %s707_s17, 128  ;;  %s594_s13 = smov [#allocation4]  }
  0x32   : > { %p459_p6 = scmp.ne.s32.totalorder %s707_s17, %s458_s5  ;;  %s463_s14 = sshll.u32 %s594_s13, 4  ;;  %s464_s14 = int_to_ptr.vmem [resolvable:$false] %s463_s14 }
  0x33   : > { %s465_s16 = scalar_lea.vmem %s464_s14, 256  ;;  %p466_p12 = scmp.lt.s32.totalorder %s707_s17, %s464_s14 }
  0x34   : > { %p461_p9 = pnand %p459_p6, %p445_p8  ;;  %p467_p7 = scmp.lt.s32.totalorder %s465_s16, %s458_s5 }
  0x36   : > { %p462_p0 = pneg %p461_p9  ;;  %p468_p13 = por %p467_p7, %p466_p12 }
  0x38   : > { %p469_p1 = pnand %p468_p13, %p462_p0 }
  0x3a   : > { %472 = shalt.err (!%p469_p1)
}
  0x3b   : > { %374 = dma.hbm_to_vmem [thread:$0]  (!%p711_p3), %s703_s15, 128, %s707_s17, %s141_s19  }
  0x3c   : > { %p862_p4 = scmp.lt.s32.totalorder %s591_s0, 3  ;;  %p863_p5 = scmp.ge.s32.totalorder %s591_s0, 1 }
  0x3d   : > { %s756_s28 = scalar_lea.hbm %s853_s2, %s356_s12  ;;  %s163_s30 = scalar_lea.vmem [#allocation7], %s355_s11 }
  0x3e   : > { %p747_p10 = pnand %p863_p5, %p862_p4  ;;  %s171_s4 = sshll.u32 %s163_s30, 4  ;;  %s172_s4 = int_to_ptr.vmem [resolvable:$true] %s171_s4 }
  0x3f   : > { %s160_s15 = scalar_lea.sflag [#allocation8], %s694_s10  ;;  %s473_s17 = scalar_lea.hbm %s756_s28, 128 }
  0x40   : > { %s864_s20 = scalar_select %p747_p10, 1, 0 }
  0x41   : > { %p474_p12 = scmp.ne.s32.totalorder %s756_s28, %s473_s17  ;;  %s478_s12 = scalar_lea.hbm %s853_s2, 256 }
  0x42   : > { %p479_p6 = scmp.lt.u32.totalorder %s756_s28, %s853_s2  ;;  %p480_p9 = scmp.lt.u32.totalorder %s478_s12, %s473_s17 }
  0x43   : > { %p476_p0 = pnand %p474_p12, %p445_p8  ;;  %p482_p13 = scmp.lt.u32.totalorder %s473_s17, %s756_s28 }
  0x44   : > { %p481_p7 = por %p480_p9, %p479_p6 }
  0x45   : > { %p477_p2 = pneg %p476_p0 }
  0x46   : > { %p483_p1 = por %p482_p13, %p481_p7 }
  0x48   : > { %p484_p4 = pnand %p483_p1, %p477_p2 }
  0x4a   : > { %487 = shalt.err (!%p484_p4)
}
  0x4b   : > { %s488_s10 = scalar_lea.vmem %s172_s4, 128  ;;  %s595_s11 = smov [#allocation7]  }
  0x4c   : > { %p489_p5 = scmp.ne.s32.totalorder %s172_s4, %s488_s10  ;;  %s493_s16 = sshll.u32 %s595_s11, 4  ;;  %s494_s16 = int_to_ptr.vmem [resolvable:$false] %s493_s16 }
  0x4d   : > { %s495_s21 = scalar_lea.vmem %s494_s16, 256  ;;  %p496_p11 = scmp.lt.s32.totalorder %s172_s4, %s494_s16 }
  0x4e   : > { %p491_p12 = pnand %p489_p5, %p445_p8  ;;  %p497_p10 = scmp.lt.s32.totalorder %s495_s21, %s488_s10 }
  0x50   : > { %p492_p0 = pneg %p491_p12  ;;  %p498_p6 = por %p497_p10, %p496_p11 }
  0x52   : > { %p499_p9 = pnand %p498_p6, %p492_p0 }
  0x54   : > { %502 = shalt.err (!%p499_p9)
}
  0x55   : > { %377 = dma.hbm_to_vmem [thread:$0]  (!%p711_p3), %s756_s28, 128, %s172_s4, %s160_s15  }
  0x56   : > { %p865_p2 = scmp.ne.s32.totalorder %s864_s20, 0 }
  0x57   : > { %s783_s27 = sand.u32 (!%p865_p2), 1, %s575_s23   ;;  %p866_p8 = scmp.ne.s32.totalorder (!%p865_p2), %s858_s6, 0 }
  0x58   : > { %180 = sbr.rel (%p865_p2) target bundleno = 131 (0x83), region = 28  ;;  %s360_s30 = sshll.u32 (!%p865_p2), %s783_s27, 3 }
  0x59   : > { %s183_s17 = scalar_lea.sflag (!%p865_p2), [#allocation5], %s783_s27  ;;  %s186_s19 = scalar_lea.vmem (!%p865_p2), [#allocation4], %s360_s30 }
  0x5f   : > { %558 = dma.done.wait (%p866_p8), %s183_s17, 128  }
  0x60   : > { %560 = vsyncadd (%p866_p8), %s183_s17, 4294967168  ;;  %s192_s18 = scalar_lea.sflag [#allocation8], %s783_s27  ;;  %s195_s28 = scalar_lea.vmem [#allocation7], %s360_s30 }
  0x61   : > { %562 = dma.done.wait (%p866_p8), %s192_s18, 128  }
  0x62   : > { %564 = vsyncadd (%p866_p8), %s192_s18, 4294967168  ;;  %s220_s20 = sld [smem:[#allocation3 + %s583_s25]]  ;;  %v224_v0 = vld [vmem:[%s186_s19] sm:$0xff]  ;;  %v225_v1 = vld [vmem:[%s195_s28] sm:$0xff]  ;;  %s219_s6 = scalar_lea.vmem [#allocation9], %s783_s27 }
  0x63   : > { %v226_v2 = vsub.f32 %v224_v0, %v225_v1  ;;  %s251_s5 = sshll.u32 %s219_s6, 4  ;;  %s362_s12 = sshll.u32 %s583_s25, 4  ;;  %s799_s5 = int_to_ptr.vmem [resolvable:$true] %s251_s5 }
  0x64   : > { %s804_s10 = scalar_lea.hbm %s854_s3, %s362_s12  ;;  %s238_s11 = scalar_lea.sflag [#allocation6], %s783_s27 }
  0x65   : > { %v227_v3 = vmul.f32 %v226_v2, %v226_v2  ;;  %s503_s16 = scalar_lea.vmem %s799_s5, 16  ;;  %p867_p10 = scmp.ne.s32.totalorder %s859_s7, 0 }
  0x66   : > { %p504_p3 = scmp.ne.s32.totalorder %s799_s5, %s503_s16  ;;  %s596_s25 = smov [#allocation9]  }
  0x67   : > { %v228_v4 = vrot.slane %v227_v3, 4  ;;  %s507_s21 = sshll.u32 %s596_s25, 4  ;;  %s508_s21 = int_to_ptr.vmem [resolvable:$false] %s507_s21 }
  0x68   : > { %p221_p11 = scmp.gt.s32.totalorder %s220_s20, 1  ;;  %p505_p7 = pnand %p504_p3, %p867_p10 }
  0x69   : > { %v229_v5 = vadd.f32 %v228_v4, %v227_v3  ;;  %s509_s30 = scalar_lea.vmem %s508_s21, 32  ;;  %p510_p1 = scmp.lt.s32.totalorder %s799_s5, %s508_s21 }
  0x6a   : > { %s222_s4 = scalar_select %p221_p11, 1, 0 }
  0x6b   : > { %v230_v6 = vrot.slane %v229_v5, 2  ;;  %p506_p13 = pneg %p505_p7  ;;  %p511_p4 = scmp.lt.s32.totalorder %s509_s30, %s503_s16 }
  0x6c   : > { %s223_s15 = scvt.s32.f32 %s222_s4 }
  0x6d   : > { %v231_v7 = vadd.f32 %v230_v6, %v229_v5  ;;  %p512_p5 = por %p511_p4, %p510_p1 }
  0x6e   : > { %v234_v9 = vstv %s223_s15 }
  0x6f   : > { %v232_v8 = vrot.slane %v231_v7, 1  ;;  %p513_p12 = pnand %p512_p5, %p506_p13 }
  0x71   : > { %v233_v10 = vadd.f32 %v232_v8, %v231_v7 }
  0x73   : > { %v235_v11 = vmul.f32 %v234_v9, %v233_v10 }
  0x75   : > { %236 = vst [vmem:[%s219_s6] sm:$0x1] %v235_v11 }
  0x76   : > { %516 = shalt.err (!%p513_p12)
}
  0x77   : > { %s517_s27 = scalar_lea.hbm %s804_s10, 16  ;;  %s521_s18 = scalar_lea.hbm %s854_s3, 32 }
  0x78   : > { %p518_p0 = scmp.ne.s32.totalorder %s804_s10, %s517_s27  ;;  %p522_p2 = scmp.lt.u32.totalorder %s804_s10, %s854_s3 }
  0x79   : > { %p523_p8 = scmp.lt.u32.totalorder %s521_s18, %s517_s27  ;;  %p525_p3 = scmp.lt.u32.totalorder %s517_s27, %s804_s10 }
  0x7a   : > { %p519_p6 = pnand %p518_p0, %p867_p10 }
  0x7b   : > { %p524_p11 = por %p523_p8, %p522_p2 }
  0x7c   : > { %p520_p9 = pneg %p519_p6 }
  0x7d   : > { %p526_p7 = por %p525_p3, %p524_p11 }
  0x7f   : > { %p527_p13 = pnand %p526_p7, %p520_p9 }
  0x81   : > { %530 = shalt.err (!%p527_p13)
}
  0x82   : > { %369 = dma.vmem_to_hbm [thread:$0]  (%p867_p10), %s799_s5, 16, %s804_s10, %s238_s11  }
  0x83 PF: > { %s263_s4 = sand.u32 1, %s571_s22   ;;  %p868_p1 = scmp.ne.s32.totalorder %s860_s9, 0 }
  0x84   : > { %p869_p4 = scmp.ge.s32.totalorder %s591_s0, 2  ;;  %s264_s15 = scalar_lea.sflag [#allocation6], %s263_s4 }
  0x86   : > { %p379_p5 = pnand %p869_p4, %p868_p1 }
  0x88   : > { %566 = dma.done.wait (!%p379_p5), %s264_s15, 16  }
  0x89   : > { %568 = vsyncadd (!%p379_p5), %s264_s15, 4294967280  ;;  %s26_s0 = sadd.s32 1, %s591_s0   ;;  %s870_s22 = smov %s575_s23 }
  0x8a   : > { %p23_p12 = scmp.ge.s32.totalorder %s26_s0, 4   ;;  %s871_s23 = smov %s579_s24 }
  0x8b   : > { %s872_s24 = smov %s685_s8  ;;  %s873_s25 = smov %s587_s26 }
  0x8c   : > { %s874_s26 = smov %s876_s29  ;;  %25 = sbr.rel (!%p23_p12) target bundleno = 20 (0x14), region = 86 }
  0x93   :  { %268 = vsyncpa [#allocation5], 1 }
  0x94   :  { %270 = vsyncpa [#allocation5 + $0x1], 1 }
  0x95   :  { %271 = vsyncpa [#allocation8], 1 }
  0x96   :  { %273 = vsyncpa [#allocation8 + $0x1], 1 }
  0x97   :  { %274 = vsyncpa [#allocation6], 1 }
  0x98   :  { %276 = vsyncpa [#allocation6 + $0x1], 1 }

</bundles_post_ra>
